<compile_context>
chip_gen: v6e
topology: v6e:2x2x1
jax: 0.10.0
libtpu: 0.0.40
codegen_flags: <defaults>
</compile_context>

<pallas_src>
import functools

import jax
import jax.numpy as jnp
from jax.experimental import pallas as pl
from jax.experimental.pallas import tpu as pltpu

FEATURES = 150          # params['features'] from the PyTorch module
BN_EPS = 1e-5
LANE = 128


def _round_up(x, m):
    return ((x + m - 1) // m) * m


def _batch_tiling(B, max_tile=2048, target_steps=4):
    """Pick (tile_b, b_pad, steps): minimal sublane padding, >=2 grid steps when
    the batch allows (v7x megacore + DMA pipelining), tiles capped at max_tile."""
    b8 = _round_up(max(B, 1), 8)
    steps = max(pl.cdiv(b8, max_tile),          # cap tile size
                min(target_steps, b8 // 8),      # aim for a few steps, >=8-row tiles
                1)
    tile_b = _round_up(pl.cdiv(b8, steps), 8)
    steps = pl.cdiv(b8, tile_b)
    b_pad = steps * tile_b                       # waste < 8*steps rows (not ~tile_b)
    return tile_b, b_pad, steps


def separable_linear_kernel(x_ref, w1_ref, b1_ref, w2_ref, b2_ref, o_ref):
    out_num = o_ref.shape[1]
    # lin1: cast x f32->bf16 in-kernel (VPU slack), MXU matmul with f32 accumulation.
    x = x_ref[...].astype(jnp.bfloat16)
    h = jnp.dot(x, w1_ref[...], preferred_element_type=jnp.float32)
    h = jnp.maximum(h + b1_ref[...], 0.0)
    # dropout: identity (eval); BatchNorm (eval) already folded into w2/b2.
    # lin2: bf16 MXU matmul, f32 accumulation; keep the padded 128-lane result in
    # vregs and store only the real out_num columns (masked vst, free under MXU).
    y = jnp.dot(h.astype(w2_ref.dtype), w2_ref[...],
                preferred_element_type=jnp.float32)
    o_ref[...] = y[:, :out_num] + b2_ref[...]


def prepare_params(w1, b1, gamma, beta, running_mean, running_var, w2, b2):
    """Fold eval-mode BN into lin2 and zero-pad to MXU-friendly shapes.

    w1: (in, F)  b1: (1, F)   gamma/beta/mean/var: (1, F)
    w2: (F, out) b2: (1, out)
    Returns (w1p bf16 (in, Fp), b1p f32 (1, Fp), w2p bf16 (Fp, Op), b2p f32 (1, out))
    with Fp, Op multiples of 128.  Call ONCE and cache -- weights are static in eval.
    """
    in_num, feat = w1.shape
    out_num = w2.shape[1]
    feat_pad = _round_up(feat, LANE)
    out_pad = _round_up(out_num, LANE)

    # BN (inference) sits after ReLU -> folds exactly into lin2.
    # NOTE: very small running_var => large scale; bf16 cast of w2' can lose a bit
    # of precision there (fine under the 3e-2 tolerance used below).
    scale = gamma * jax.lax.rsqrt(running_var + BN_EPS)          # (1, F)
    w2_f = w2 * scale.reshape(-1, 1)                             # (F, out)
    b2_f = b2 + (beta - running_mean * scale) @ w2               # (1, out)

    # Zero-padding is exact: padded h columns are relu(x@0 + 0) = 0 and the matching
    # w2' rows are zero, so padded dims contribute nothing.
    w1p = jnp.zeros((in_num, feat_pad), jnp.float32).at[:, :feat].set(w1)
    b1p = jnp.zeros((1, feat_pad), jnp.float32).at[:, :feat].set(b1)
    w2p = jnp.zeros((feat_pad, out_pad), jnp.float32).at[:feat, :out_num].set(w2_f)

    return (w1p.astype(jnp.bfloat16), b1p,
            w2p.astype(jnp.bfloat16), b2_f.astype(jnp.float32))


@functools.partial(jax.jit, static_argnames=("tile_b", "b_pad"))
def _separable_linear_fwd(x, w1p, b1p, w2p, b2p, *, tile_b, b_pad):
    B, in_num = x.shape
    feat_pad = w1p.shape[1]
    out_pad = w2p.shape[1]
    out_num = b2p.shape[1]

    if b_pad != B:
        # Minimal sublane padding only (f32, no dtype cast here).
        x = jnp.zeros((b_pad, in_num), x.dtype).at[:B, :].set(x)

    grid = (b_pad // tile_b,)
    out = pl.pallas_call(
        separable_linear_kernel,
        out_shape=jax.ShapeDtypeStruct((b_pad, out_num), jnp.float32),
        grid_spec=pltpu.PrefetchScalarGridSpec(
            num_scalar_prefetch=0,
            grid=grid,
            in_specs=[
                pl.BlockSpec((tile_b, in_num), lambda i: (i, 0)),     # x tile (f32)
                pl.BlockSpec((in_num, feat_pad), lambda i: (0, 0)),   # w1 resident
                pl.BlockSpec((1, feat_pad), lambda i: (0, 0)),        # b1 resident
                pl.BlockSpec((feat_pad, out_pad), lambda i: (0, 0)),  # w2' resident
                pl.BlockSpec((1, out_num), lambda i: (0, 0)),         # b2' resident
            ],
            out_specs=pl.BlockSpec((tile_b, out_num), lambda i: (i, 0)),
        ),
        compiler_params=pltpu.CompilerParams(
            dimension_semantics=("parallel",)),
    )(x, w1p, b1p, w2p, b2p)

    return out[:B] if b_pad != B else out


def separable_linear(x, prepared_params):
    tile_b, b_pad, _ = _batch_tiling(x.shape[0])
    return _separable_linear_fwd(x, *prepared_params, tile_b=tile_b, b_pad=b_pad)


def reference(x, w1, b1, gamma, beta, running_mean, running_var, w2, b2):
    h = jnp.maximum(x @ w1 + b1, 0.0)
    h = (h - running_mean) * jax.lax.rsqrt(running_var + BN_EPS) * gamma + beta
    return h @ w2 + b2


if __name__ == "__main__":
    # Small, forward-implied shapes: x is (batch, in_num)
    B, in_num, out_num = 8, 32, 16
    feature = FEATURES

    key = jax.random.PRNGKey(0)
    kx, kw1, kb1, kw2, kb2, kg, kbt, km, kv = jax.random.split(key, 9)

    x = jax.random.normal(kx, (B, in_num), dtype=jnp.float32)

    # Deterministic parameter init (synthetic, PyTorch-Linear-like uniform scale)
    lim1 = 1.0 / jnp.sqrt(in_num)
    w1 = jax.random.uniform(kw1, (in_num, feature), minval=-lim1, maxval=lim1,
                            dtype=jnp.float32)                      # lin1 weight^T
    b1 = jax.random.uniform(kb1, (1, feature), minval=-lim1, maxval=lim1,
                            dtype=jnp.float32)                      # lin1 bias

    lim2 = 1.0 / jnp.sqrt(feature)
    w2 = jax.random.uniform(kw2, (feature, out_num), minval=-lim2, maxval=lim2,
                            dtype=jnp.float32)                      # lin2 weight^T
    b2 = jax.random.uniform(kb2, (1, out_num), minval=-lim2, maxval=lim2,
                            dtype=jnp.float32)                      # lin2 bias

    # BatchNorm1d(features) parameters + running stats (inference mode)
    gamma = 1.0 + 0.1 * jax.random.normal(kg, (1, feature), dtype=jnp.float32)
    beta = 0.1 * jax.random.normal(kbt, (1, feature), dtype=jnp.float32)
    running_mean = 0.1 * jax.random.normal(km, (1, feature), dtype=jnp.float32)
    running_var = 1.0 + 0.1 * jax.random.uniform(kv, (1, feature), dtype=jnp.float32)

    # BN fold / pad / cast done ONCE (static in eval), then the jitted fused kernel.
    prepared = jax.tree_util.tree_map(jax.block_until_ready,
                                      prepare_params(w1, b1, gamma, beta,
                                                     running_mean, running_var,
                                                     w2, b2))

    out = separable_linear(x, prepared)
    out = jax.block_until_ready(out)

    ref = reference(x, w1, b1, gamma, beta, running_mean, running_var, w2, b2)
    assert out.shape == (B, out_num), f"bad shape {out.shape}"
    # bf16 matmul inputs (f32 accumulation) -> slightly looser tolerance vs f32 ref
    assert jnp.allclose(out, ref, atol=3e-2, rtol=3e-2), "mismatch vs JAX reference"

    print("KERNEL_OK")
</pallas_src>

<mosaic_0001>
module attributes {stable_mosaic.version = 11 : i64} {
  func.func @separable_linear_kernel(%arg0: i32, %arg1: memref<8x32xf32, #tpu.memory_space<vmem>>, %arg2: memref<32x256xbf16, #tpu.memory_space<vmem>>, %arg3: memref<1x256xf32, #tpu.memory_space<vmem>>, %arg4: memref<256x128xbf16, #tpu.memory_space<vmem>>, %arg5: memref<1x16xf32, #tpu.memory_space<vmem>>, %arg6: memref<8x16xf32, #tpu.memory_space<vmem>>) attributes {dimension_semantics = [#tpu.dimension_semantics<parallel>], iteration_bounds = array<i64: 1>, scalar_prefetch = 0 : i64, scratch_operands = 0 : i64, tpu.core_type = #tpu.core_type<tc>, window_params = [{transform_indices = @transform_0, window_bounds = array<i64: 8, 32>}, {pipeline_mode = #tpu.pipeline_mode<synchronous>, transform_indices = @transform_1, window_bounds = array<i64: 32, 256>}, {pipeline_mode = #tpu.pipeline_mode<synchronous>, transform_indices = @transform_2, window_bounds = array<i64: 1, 256>}, {pipeline_mode = #tpu.pipeline_mode<synchronous>, transform_indices = @transform_3, window_bounds = array<i64: 256, 128>}, {pipeline_mode = #tpu.pipeline_mode<synchronous>, transform_indices = @transform_4, window_bounds = array<i64: 1, 16>}, {transform_indices = @transform_5, window_bounds = array<i64: 8, 16>}]} {
    %c0 = arith.constant 0 : index
    %c0_0 = arith.constant 0 : index
    %0 = vector.load %arg1[%c0, %c0_0] : memref<8x32xf32, #tpu.memory_space<vmem>>, vector<8x32xf32>
    %1 = arith.truncf %0 : vector<8x32xf32> to vector<8x32xbf16>
    %c0_1 = arith.constant 0 : index
    %c0_2 = arith.constant 0 : index
    %2 = vector.load %arg2[%c0_1, %c0_2] : memref<32x256xbf16, #tpu.memory_space<vmem>>, vector<32x256xbf16>
    %cst = arith.constant dense<0.000000e+00> : vector<8x256xf32>
    %3 = tpu.matmul %1, %2, %cst {dimension_numbers = #tpu.dot_dimension_numbers<[1], [0], [0], [1], [0, 0, 1, 1], [], []>} : vector<8x32xbf16>, vector<32x256xbf16>, vector<8x256xf32> -> vector<8x256xf32>
    %c0_3 = arith.constant 0 : index
    %c0_4 = arith.constant 0 : index
    %4 = vector.load %arg3[%c0_3, %c0_4] : memref<1x256xf32, #tpu.memory_space<vmem>>, vector<1x256xf32>
    %5 = vector.broadcast %4 : vector<1x256xf32> to vector<8x256xf32>
    %6 = arith.addf %3, %5 : vector<8x256xf32>
    %cst_5 = arith.constant 0.000000e+00 : f32
    %7 = vector.broadcast %cst_5 : f32 to vector<8x256xf32>
    %8 = arith.maximumf %6, %7 : vector<8x256xf32>
    %9 = arith.truncf %8 : vector<8x256xf32> to vector<8x256xbf16>
    %c0_6 = arith.constant 0 : index
    %c0_7 = arith.constant 0 : index
    %10 = vector.load %arg4[%c0_6, %c0_7] : memref<256x128xbf16, #tpu.memory_space<vmem>>, vector<256x128xbf16>
    %cst_8 = arith.constant dense<0.000000e+00> : vector<8x128xf32>
    %11 = tpu.matmul %9, %10, %cst_8 {dimension_numbers = #tpu.dot_dimension_numbers<[1], [0], [0], [1], [0, 0, 1, 1], [], []>} : vector<8x256xbf16>, vector<256x128xbf16>, vector<8x128xf32> -> vector<8x128xf32>
    %12 = vector.extract_strided_slice %11 {offsets = [0, 0], sizes = [8, 16], strides = [1, 1]} : vector<8x128xf32> to vector<8x16xf32>
    %c0_9 = arith.constant 0 : index
    %c0_10 = arith.constant 0 : index
    %13 = vector.load %arg5[%c0_9, %c0_10] : memref<1x16xf32, #tpu.memory_space<vmem>>, vector<1x16xf32>
    %14 = vector.broadcast %13 : vector<1x16xf32> to vector<8x16xf32>
    %15 = arith.addf %12, %14 : vector<8x16xf32>
    %c0_11 = arith.constant 0 : index
    %c0_12 = arith.constant 0 : index
    %16 = vector.load %arg6[%c0_11, %c0_12] : memref<8x16xf32, #tpu.memory_space<vmem>>, vector<8x16xf32>
    tpu.vector_store %arg6[%c0_11, %c0_12], %15 {strides = array<i32>} : memref<8x16xf32, #tpu.memory_space<vmem>>, vector<8x16xf32>,
    return
  }
  func.func @transform_0(%arg0: i32) -> (i32, i32) {
    %c0_i32 = arith.constant 0 : i32
    %c0_i32_0 = arith.constant 0 : i32
    return %arg0, %c0_i32 : i32, i32
  }
  func.func @transform_1(%arg0: i32) -> (i32, i32) {
    %c0_i32 = arith.constant 0 : i32
    %c0_i32_0 = arith.constant 0 : i32
    %c0_i32_1 = arith.constant 0 : i32
    return %c0_i32, %c0_i32_0 : i32, i32
  }
  func.func @transform_2(%arg0: i32) -> (i32, i32) {
    %c0_i32 = arith.constant 0 : i32
    %c0_i32_0 = arith.constant 0 : i32
    %c0_i32_1 = arith.constant 0 : i32
    return %c0_i32, %c0_i32_0 : i32, i32
  }
  func.func @transform_3(%arg0: i32) -> (i32, i32) {
    %c0_i32 = arith.constant 0 : i32
    %c0_i32_0 = arith.constant 0 : i32
    %c0_i32_1 = arith.constant 0 : i32
    return %c0_i32, %c0_i32_0 : i32, i32
  }
  func.func @transform_4(%arg0: i32) -> (i32, i32) {
    %c0_i32 = arith.constant 0 : i32
    %c0_i32_0 = arith.constant 0 : i32
    %c0_i32_1 = arith.constant 0 : i32
    return %c0_i32, %c0_i32_0 : i32, i32
  }
  func.func @transform_5(%arg0: i32) -> (i32, i32) {
    %c0_i32 = arith.constant 0 : i32
    %c0_i32_0 = arith.constant 0 : i32
    return %arg0, %c0_i32 : i32, i32
  }
}

</mosaic_0001>

<bundles_post_ra>
// kernel: _separable_linear_fwd.1
= control target key start
LH: loop header
LB: loop body
LE: loop exit
PB: predicated region body
PF: predicated region fallthrough
CT: control target
= control target key end

     0   :  { %10 = vsyncpa [#allocation3], 0  ;;  %s560_s0 = inlined_call_operand.hbm [shape: f32[8,32], index: 0, kind: input, shape index: {}]   ;;  %s561_s1 = inlined_call_operand.hbm [shape: bf16[32,256], index: 1, kind: input, shape index: {}]   ;;  %s562_s2 = inlined_call_operand.vmem [shape: f32[1,256], index: 2, kind: input, shape index: {}]   ;;  %s563_s3 = inlined_call_operand.hbm [shape: bf16[256,128], index: 3, kind: input, shape index: {}]   ;;  %s564_s4 = inlined_call_operand.vmem [shape: f32[1,16], index: 4, kind: input, shape index: {}]   ;;  %s565_s5 = inlined_call_operand.hbm [shape: f32[8,16], index: 5, kind: output, shape index: {}]  }
   0x1   :  { %11 = vsyncpa [#allocation6], 0 }
   0x2   :  { %12 = vsyncpa [#allocation4], 0  ;;  %s503_s18 = smov [#allocation5]  }
   0x3   :  { %s28_s19 = sshll.u32 %s503_s18, 4  ;;  %s29_s19 = int_to_ptr.vmem [resolvable:$true] %s28_s19 }
   0x4   :  { %s425_s20 = scalar_lea.vmem %s29_s19, 512  ;;  %p430_p1 = scmp.lt.s32.totalorder %s29_s19, %s29_s19 }
   0x5   :  { %p426_p0 = scmp.ne.s32.totalorder %s29_s19, %s425_s20  ;;  %p431_p2 = scmp.lt.s32.totalorder %s425_s20, %s425_s20 }
   0x7   :  { %p432_p3 = por %p431_p2, %p430_p1 }
   0x9   :  { %p433_p4 = pnand %p432_p3, %p426_p0 }
   0xb   :  { %436 = shalt.err (!%p433_p4)
}
   0xc   :  { %s504_s21 = smov 128   ;;  %s505_s22 = smov 8  }
   0xd   :  { %34 = dma.hbm_to_vmem [thread:$0]  %s561_s1, 512, %s29_s19, [#allocation6], %s504_s21, %s504_s21, %s505_s22  }
   0xe   :  { %s506_s25 = smov [#allocation2]   ;;  %s507_s27 = smov [#allocation7]  }
   0xf   :  { %s19_s26 = sshll.u32 %s506_s25, 4  ;;  %s42_s28 = sshll.u32 %s507_s27, 4  ;;  %s20_s26 = int_to_ptr.vmem [resolvable:$true] %s19_s26  ;;  %s43_s28 = int_to_ptr.vmem [resolvable:$true] %s42_s28 }
  0x10   :  { %s445_s29 = scalar_lea.vmem %s20_s26, 128  ;;  %p450_p6 = scmp.lt.s32.totalorder %s20_s26, %s20_s26 }
  0x11   :  { %p446_p5 = scmp.ne.s32.totalorder %s20_s26, %s445_s29  ;;  %p451_p7 = scmp.lt.s32.totalorder %s445_s29, %s445_s29 }
  0x13   :  { %p452_p8 = por %p451_p7, %p450_p6 }
  0x15   :  { %p453_p9 = pnand %p452_p8, %p446_p5 }
  0x17   :  { %456 = shalt.err (!%p453_p9)
}
  0x18   :  { %22 = dma.hbm_to_vmem [thread:$0]  %s560_s0, 128, %s20_s26, [#allocation3]  }
  0x19   :  { %s465_s7 = scalar_lea.vmem %s43_s28, 2048  ;;  %p470_p11 = scmp.lt.s32.totalorder %s43_s28, %s43_s28 }
  0x1a   :  { %p466_p10 = scmp.ne.s32.totalorder %s43_s28, %s465_s7  ;;  %p471_p12 = scmp.lt.s32.totalorder %s465_s7, %s465_s7 }
  0x1c   :  { %p472_p13 = por %p471_p12, %p470_p11 }
  0x1e   :  { %p473_p0 = pnand %p472_p13, %p466_p10 }
  0x20   :  { %476 = shalt.err (!%p473_p0)
}
  0x21   :  { %s508_s1 = smov 64   ;;  %s509_s8 = smov 4  }
  0x22   :  { %48 = dma.hbm_to_vmem [thread:$0]  %s563_s3, 2048, %s43_s28, [#allocation6], %s508_s1, %s508_s1, %s509_s8  }
  0x23   :  { %497 = dma.done.wait [#allocation3], 128  }
  0x24   :  { %498 = vsyncadd [#allocation3], 4294967168 }
  0x25   :  { %499 = dma.done.wait [#allocation6], 2560  }
  0x26   :  { %500 = vsyncadd [#allocation6], 4294964736  ;;  %v510_v0 = vmov 0   ;;  %v395_v1 = vld [vmem:[#allocation5 + $0x14] ss:$8 sps:$4 sm:$0xff]   ;;  %vm99_vm0 = vcmask 261120   ;;  %v69_v23 = vlaneseq }
  0x27   :  { %135 = vmatprep.mubr.bf16.mxu0 %v510_v0  ;;  %v397_v2 = vld [vmem:[#allocation5 + $0x10] ss:$8 sps:$4 sm:$0xff]   ;;  %115 = vmatprep.subr.bf16.mxu0 %v395_v1  ;;  %v398_v3 = vld [vmem:[#allocation5 + $0x4] ss:$8 sps:$4 sm:$0xff]   ;;  %v400_v4 = vld [vmem:[#allocation5] ss:$8 sps:$4 sm:$0xff]  }
  0x28   :  { %v61_v5 = vld [vmem:[#allocation2] sm:$0xff]  ;;  %116 = vmatpush1.bf16.msra.mxu0 %v397_v2  ;;  %v403_v8 = vld [vmem:[#allocation7 + $0x70] sm:$0xff]   ;;  %v405_v11 = vld [vmem:[#allocation7 + $0x68] sm:$0xff]   ;;  %v70_v24 = vshrl.u32 %v69_v23, 7  ;;  %vm324_vm1 = vcmask 130048  }
  0x29   :  { %v401_v6 = vld [vmem:[#allocation7 + $0x78] sm:$0xff]   ;;  %117 = vmatprep.subr.bf16.mxu0 %v398_v3  ;;  %v62_v9 = vpack.c.bf16 %v61_v5, %v61_v5  ;;  %v404_v10 = vld [vmem:[#allocation7 + $0x30] sm:$0xff]   ;;  %v406_v12 = vld [vmem:[#allocation7 + $0x28] sm:$0xff]  }
  0x2a   :  { %v402_v7 = vld [vmem:[#allocation7 + $0x38] sm:$0xff]   ;;  %364 = vmatprep.subr.bf16.mxu1 %v401_v6  ;;  %v407_v13 = vld [vmem:[#allocation7 + $0x60] sm:$0xff]   ;;  %v411_v17 = vld [vmem:[#allocation7 + $0x50] sm:$0xff]   ;;  %v71_v25 = vsub.s32 0, %v70_v24  ;;  %v75_v27 = vsub.s32 1, %v70_v24 }
  0x2b   :  { %365 = vmatpush3.bf16.msra.mxu1 %v402_v7  ;;  %v408_v14 = vld [vmem:[#allocation7 + $0x20] sm:$0xff]   ;;  %v409_v15 = vld [vmem:[#allocation7 + $0x58] sm:$0xff]   ;;  %v412_v18 = vld [vmem:[#allocation7 + $0x10] sm:$0xff]  }
  0x2c   :  { %118 = vmatpush1.bf16.msra.mxu0 %v400_v4  ;;  %366 = vmatprep.subr.bf16.mxu1 %v403_v8  ;;  %v410_v16 = vld [vmem:[#allocation7 + $0x18] sm:$0xff]   ;;  %v413_v19 = vld [vmem:[#allocation7 + $0x48] sm:$0xff]   ;;  %v415_v21 = vld [vmem:[#allocation7 + $0x40] sm:$0xff]  }
  0x2d   :  { %v414_v20 = vld [vmem:[#allocation7 + $0x8] sm:$0xff]   ;;  %v416_v22 = vld [vmem:[#allocation7] sm:$0xff]   ;;  %v67_v26 = vld [vmem:[%s562_s2] sm:$0x3]  ;;  %s511_s2 = smov [#allocation8]  }
  0x2e   :  { %v72_v28 = vrot.slane %v67_v26, %v71_v25  ;;  %v76_v29 = vrot.slane %v67_v26, %v75_v27  ;;  %v363_v42 = vld [vmem:[%s564_s4] ss:$0 sm:$0xff]  ;;  %s332_s13 = sshll.u32 %s511_s2, 4  ;;  %s333_s13 = int_to_ptr.vmem [resolvable:$true] %s332_s13 }
  0x2f   :  { %346 = vmatmul.mubr.msk.bf16.vlgmr.msra.gmra.mxu0 %vm99_vm0, %v62_v9  ;;  %367 = vmatpush3.bf16.msra.mxu1 %v404_v10  ;;  %s477_s14 = scalar_lea.vmem %s333_s13, 128  ;;  %p482_p2 = scmp.lt.s32.totalorder %s333_s13, %s333_s13 }
  0x30   :  { %368 = vmatprep.subr.bf16.mxu1 %v405_v11  ;;  %p478_p1 = scmp.ne.s32.totalorder %s333_s13, %s477_s14  ;;  %p483_p3 = scmp.lt.s32.totalorder %s477_s14, %s477_s14 }
  0x32   :  { %p484_p4 = por %p483_p3, %p482_p2 }
  0x33   :  { %369 = vmatpush3.bf16.msra.mxu1 %v406_v12 }
  0x34   :  { %370 = vmatprep.subr.bf16.mxu1 %v407_v13  ;;  %p485_p5 = pnand %p484_p4, %p478_p1 }
  0x37   :  { %371 = vmatpush3.bf16.msra.mxu1 %v408_v14 }
  0x38   :  { %372 = vmatprep.subr.bf16.mxu1 %v409_v15 }
  0x3b   :  { %373 = vmatpush3.bf16.msra.mxu1 %v410_v16 }
  0x3c   :  { %374 = vmatprep.subr.bf16.mxu1 %v411_v17 }
  0x3f   :  { %375 = vmatpush3.bf16.msra.mxu1 %v412_v18 }
  0x40   :  { %376 = vmatprep.subr.bf16.mxu1 %v413_v19 }
  0x43   :  { %377 = vmatpush3.bf16.msra.mxu1 %v414_v20 }
  0x44   :  { %378 = vmatprep.subr.bf16.mxu1 %v415_v21 }
  0x47   :  { %379 = vmatpush3.bf16.msra.mxu1 %v416_v22 }
  0xef   :  { %v137_v30 = vpop.f32.mrf.mxu0 }
  0xf0   :  { %v138_v31 = vadd.f32 %v137_v30, %v72_v28 }
  0xf1   :  { %v139_v32 = vpop.f32.mrf.mxu0 }
  0xf2   :  { %v140_v33 = vadd.f32 %v139_v32, %v76_v29  ;;  %v144_v34 = vmax.f32 %v138_v31, 0.0 }
  0xf3   :  { %v141_v35 = vpop.f32.mrf.mxu0 }
  0xf4   :  { %v145_v36 = vmax.f32 %v140_v33, 0.0  ;;  %v146_v39 = vpack.c.bf16 %v144_v34, %v144_v34 }
  0xf5   :  { %v142_v37 = vpop.f32.mrf.mxu0 }
  0xf6   :  { %v147_v38 = vpack.c.bf16 %v145_v36, %v145_v36 }
  0xf8   :  { %308 = vmatprep.mubr.bf16.mxu1 %v147_v38 }
  0xf9   :  { %309 = vmatmul.mubr.bf16.vlgmr.msra.gmra.mxu1 %v146_v39 }
 0x1b9   :  { %v380_v40 = vpop.f32.mrf.mxu1 }
 0x1bb   :  { %v381_v41 = vpop.f32.mrf.mxu1 }
 0x1bc   :  { %v382_v43 = vadd.f32 %v381_v41, %v380_v40 }
 0x1bd   :  { %v383_v44 = vpop.f32.mrf.mxu1 }
 0x1be   :  { %v323_v45 = vadd.f32 %v382_v43, %v363_v42 }
 0x1bf   :  { %v384_v46 = vpop.f32.mrf.mxu1 }
 0x1c0   :  { %325 = vst.msk [vmem:[#allocation8] sm:$0xff] %vm324_vm1, %v323_v45 }
 0x1c1   :  { %488 = shalt.err (!%p485_p5)
}
 0x1c2   :  { %335 = dma.vmem_to_hbm [thread:$0]  %s333_s13, 128, %s565_s5, [#allocation4]  }
 0x1c3   :  { %501 = dma.done.wait [#allocation4], 128  }
 0x1c4   :  { %502 = vsyncadd [#allocation4], 4294967168 }
 0x1c5   :  { %339 = vsyncpa [#allocation3], 1 }
 0x1c6   :  { %340 = vsyncpa [#allocation6], 1 }
 0x1c7   :  { %341 = vsyncpa [#allocation4], 1 }

</bundles_post_ra>
